<compile_context>
chip_gen: v6e
topology: v6e:2x2x1
jax: 0.10.0
libtpu: 0.0.40
codegen_flags: <defaults>
</compile_context>

<pallas_src>
import functools

import jax
import jax.numpy as jnp
from jax import lax
from jax.experimental import pallas as pl
from jax.experimental.pallas import tpu as pltpu


# ----------------------------------------------------------------------------
# Pallas kernel: fused (dilated) conv + folded-BN affine + ReLU for one image.
#   x_ref : (1, Cin, H*W)        input image, channels on sublanes, H*W on lanes
#   w_ref : (Cout, ntaps*Cin)    im2col weight matrix, k = tap*Cin + cin
#   m_ref : (ntaps, 1, H*W)      per-tap zero-padding validity masks
#   s_ref : (Cout, 1)            folded BN scale
#   b_ref : (Cout, 1)            folded BN bias
#   o_ref : (1, Cout, H*W)
# ----------------------------------------------------------------------------
def _aspp_conv_bn_relu_kernel(x_ref, w_ref, m_ref, s_ref, b_ref, o_ref, *,
                              offsets, H, W, mxu_dtype):
    HW = H * W
    x = x_ref[0]                                        # (Cin, HW)
    lane_axis = x.ndim - 1                              # pltpu.roll needs axis >= 0

    taps = []
    for t, (ty, tx) in enumerate(offsets):
        s = ty * W + tx                                 # flattened spatial offset
        # result[q] = x[q + s]  (positions that would wrap are zeroed by the mask)
        if s == 0:
            xt = x
        else:
            xt = pltpu.roll(x, shift=(-s) % HW, axis=lane_axis)
        if ty != 0 or tx != 0:
            xt = xt * m_ref[t]                          # (1, HW) broadcast over Cin
        taps.append(xt)
    patches = taps[0] if len(taps) == 1 else jnp.concatenate(taps, axis=0)

    # Single MXU matmul: (Cout, K) x (K, HW) -> (Cout, HW), f32 accumulation.
    acc = jnp.dot(w_ref[...].astype(mxu_dtype), patches.astype(mxu_dtype),
                  preferred_element_type=jnp.float32)

    y = acc * s_ref[...] + b_ref[...]                   # folded BN (eval) affine
    o_ref[0] = jnp.maximum(y, 0.0).astype(o_ref.dtype)  # ReLU


# ----------------------------------------------------------------------------
# Wrapper: NCHW in, NCHW out (matching the PyTorch module).
# ----------------------------------------------------------------------------
def aspp_forward(x_nchw, w, gamma, beta, mean, var, *, dilation,
                 eps=1e-5, mxu_dtype=jnp.float32):
    B, Cin, H, W_ = x_nchw.shape
    kh, kw_, cin_w, Cout = w.shape
    assert cin_w == Cin

    # ASPPModule's constructor logic.
    if dilation == 1:
        assert kh == 1 and kw_ == 1
        offsets = ((0, 0),)
    else:
        assert kh == 3 and kw_ == 3
        offsets = tuple(((ky - 1) * dilation, (kx - 1) * dilation)
                        for ky in range(3) for kx in range(3))
    ntaps = len(offsets)
    HW = H * W_

    # Weights as one im2col matrix (Cout, ntaps*Cin), k = (ky*3+kx)*Cin + cin.
    w2d = jnp.transpose(w, (3, 0, 1, 2)).reshape(Cout, ntaps * Cin)

    # Per-tap validity masks over the flattened spatial axis (implements the
    # zero padding in-kernel -> no host-side jnp.pad HBM round trip).
    q = jnp.arange(HW, dtype=jnp.int32)
    yq, xq = q // W_, q % W_
    masks = [((yq + ty >= 0) & (yq + ty < H) & (xq + tx >= 0) & (xq + tx < W_))
             .astype(jnp.float32) for (ty, tx) in offsets]
    mask = jnp.stack(masks, axis=0).reshape(ntaps, 1, HW)

    # Fold BatchNorm (eval mode) into a per-channel affine.
    inv_std = gamma / jnp.sqrt(var + eps)
    scale = inv_std.reshape(Cout, 1)
    bias = (beta - inv_std * mean).reshape(Cout, 1)

    x_flat = x_nchw.reshape(B, Cin, HW)                 # lane-dense spatial axis

    kernel = functools.partial(_aspp_conv_bn_relu_kernel, offsets=offsets,
                               H=H, W=W_, mxu_dtype=mxu_dtype)
    out = pl.pallas_call(
        kernel,
        out_shape=jax.ShapeDtypeStruct((B, Cout, HW), jnp.float32),
        grid=(B,),
        in_specs=[
            pl.BlockSpec((1, Cin, HW), lambda b: (b, 0, 0)),
            pl.BlockSpec((Cout, ntaps * Cin), lambda b: (0, 0)),
            pl.BlockSpec((ntaps, 1, HW), lambda b: (0, 0, 0)),
            pl.BlockSpec((Cout, 1), lambda b: (0, 0)),
            pl.BlockSpec((Cout, 1), lambda b: (0, 0)),
        ],
        out_specs=pl.BlockSpec((1, Cout, HW), lambda b: (b, 0, 0)),
        compiler_params=pltpu.CompilerParams(
            dimension_semantics=("parallel",),
            vmem_limit_bytes=32 * 1024 * 1024),
    )(x_flat, w2d, mask, scale, bias)

    return out.reshape(B, Cout, H, W_)


# ----------------------------------------------------------------------------
# Parameter construction following ASPPModule._init_weight (+ synthetic running
# stats so the folded BN affine is non-trivial in eval mode).
# ----------------------------------------------------------------------------
def init_params(key, inplanes, planes, kernel_size):
    kw, km, kv = jax.random.split(key, 3)
    n = kernel_size * kernel_size * planes
    w = jnp.sqrt(2.0 / n) * jax.random.normal(
        kw, (kernel_size, kernel_size, inplanes, planes), jnp.float32)
    gamma = jnp.ones((planes,), jnp.float32)            # BN weight.fill_(1)
    beta = jnp.zeros((planes,), jnp.float32)            # BN bias.zero_()
    mean = 0.1 * jax.random.normal(km, (planes,), jnp.float32)   # running stats
    var = 0.5 + jax.random.uniform(kv, (planes,), jnp.float32)
    return dict(w=w, gamma=gamma, beta=beta, mean=mean, var=var)


# Plain-JAX reference (correctness check).
def _reference_forward(x, w, gamma, beta, mean, var, *, dilation, padding, eps=1e-5):
    y = lax.conv_general_dilated(
        x, w, window_strides=(1, 1),
        padding=((padding, padding), (padding, padding)),
        rhs_dilation=(dilation, dilation),
        dimension_numbers=("NCHW", "HWIO", "NCHW"),
        precision=lax.Precision.HIGHEST)
    inv_std = gamma / jnp.sqrt(var + eps)
    scale = inv_std[None, :, None, None]
    bias = (beta - inv_std * mean)[None, :, None, None]
    return jnp.maximum(y * scale + bias, 0.0)


if __name__ == "__main__":
    B, inplanes, H, W = 2, 4, 16, 16
    planes = 32

    key = jax.random.PRNGKey(0)
    kx, k1, k2 = jax.random.split(key, 3)
    x = jax.random.normal(kx, (B, inplanes, H, W), jnp.float32)

    # Atrous branch: dilation=2 -> 3x3 dilated conv, padding=2.
    p_atrous = init_params(k1, inplanes, planes, kernel_size=3)
    out_atrous = aspp_forward(x, **p_atrous, dilation=2)
    jax.block_until_ready(out_atrous)
    ref_atrous = _reference_forward(x, **p_atrous, dilation=2, padding=2)
    assert out_atrous.shape == (B, planes, H, W)
    assert jnp.allclose(out_atrous, ref_atrous, atol=1e-4, rtol=1e-4), \
        "atrous branch mismatch vs reference"

    # dilation=1 branch: ASPPModule collapses to a 1x1 conv, padding=0.
    p_1x1 = init_params(k2, inplanes, planes, kernel_size=1)
    out_1x1 = aspp_forward(x, **p_1x1, dilation=1)
    jax.block_until_ready(out_1x1)
    ref_1x1 = _reference_forward(x, **p_1x1, dilation=1, padding=0)
    assert jnp.allclose(out_1x1, ref_1x1, atol=1e-4, rtol=1e-4), \
        "1x1 branch mismatch vs reference"

    print("KERNEL_OK")
</pallas_src>

<mosaic_0001>
module attributes {stable_mosaic.version = 11 : i64} {
  func.func @_aspp_conv_bn_relu_kernel(%arg0: i32, %arg1: memref<1x4x256xf32, #tpu.memory_space<vmem>>, %arg2: memref<32x36xf32, #tpu.memory_space<vmem>>, %arg3: memref<9x1x256xf32, #tpu.memory_space<vmem>>, %arg4: memref<32x1xf32, #tpu.memory_space<vmem>>, %arg5: memref<32x1xf32, #tpu.memory_space<vmem>>, %arg6: memref<1x32x256xf32, #tpu.memory_space<vmem>>) attributes {dimension_semantics = [#tpu.dimension_semantics<parallel>], iteration_bounds = array<i64: 2>, scalar_prefetch = 0 : i64, scratch_operands = 0 : i64, tpu.core_type = #tpu.core_type<tc>, window_params = [{transform_indices = @transform_0, window_bounds = array<i64: 1, 4, 256>}, {pipeline_mode = #tpu.pipeline_mode<synchronous>, transform_indices = @transform_1, window_bounds = array<i64: 32, 36>}, {pipeline_mode = #tpu.pipeline_mode<synchronous>, transform_indices = @transform_2, window_bounds = array<i64: 9, 1, 256>}, {pipeline_mode = #tpu.pipeline_mode<synchronous>, transform_indices = @transform_3, window_bounds = array<i64: 32, 1>}, {pipeline_mode = #tpu.pipeline_mode<synchronous>, transform_indices = @transform_4, window_bounds = array<i64: 32, 1>}, {transform_indices = @transform_5, window_bounds = array<i64: 1, 32, 256>}]} {
    %c0 = arith.constant 0 : index
    %c0_0 = arith.constant 0 : index
    %c0_1 = arith.constant 0 : index
    %0 = vector.load %arg1[%c0, %c0_0, %c0_1] : memref<1x4x256xf32, #tpu.memory_space<vmem>>, vector<1x4x256xf32>
    %1 = vector.shape_cast %0 : vector<1x4x256xf32> to vector<4x256xf32>
    %c34_i32 = arith.constant 34 : i32
    %2 = tpu.dynamic_rotate %1 by %c34_i32 dim 1 : vector<4x256xf32>, i32 -> vector<4x256xf32>
    %c0_2 = arith.constant 0 : index
    %c0_3 = arith.constant 0 : index
    %c0_4 = arith.constant 0 : index
    %3 = vector.load %arg3[%c0_2, %c0_3, %c0_4] : memref<9x1x256xf32, #tpu.memory_space<vmem>>, vector<1x1x256xf32>
    %4 = vector.shape_cast %3 : vector<1x1x256xf32> to vector<1x256xf32>
    %5 = vector.broadcast %4 : vector<1x256xf32> to vector<4x256xf32>
    %6 = arith.mulf %2, %5 : vector<4x256xf32>
    %c32_i32 = arith.constant 32 : i32
    %7 = tpu.dynamic_rotate %1 by %c32_i32 dim 1 : vector<4x256xf32>, i32 -> vector<4x256xf32>
    %c1 = arith.constant 1 : index
    %c0_5 = arith.constant 0 : index
    %c0_6 = arith.constant 0 : index
    %8 = vector.load %arg3[%c1, %c0_5, %c0_6] : memref<9x1x256xf32, #tpu.memory_space<vmem>>, vector<1x1x256xf32>
    %9 = vector.shape_cast %8 : vector<1x1x256xf32> to vector<1x256xf32>
    %10 = vector.broadcast %9 : vector<1x256xf32> to vector<4x256xf32>
    %11 = arith.mulf %7, %10 : vector<4x256xf32>
    %c30_i32 = arith.constant 30 : i32
    %12 = tpu.dynamic_rotate %1 by %c30_i32 dim 1 : vector<4x256xf32>, i32 -> vector<4x256xf32>
    %c2 = arith.constant 2 : index
    %c0_7 = arith.constant 0 : index
    %c0_8 = arith.constant 0 : index
    %13 = vector.load %arg3[%c2, %c0_7, %c0_8] : memref<9x1x256xf32, #tpu.memory_space<vmem>>, vector<1x1x256xf32>
    %14 = vector.shape_cast %13 : vector<1x1x256xf32> to vector<1x256xf32>
    %15 = vector.broadcast %14 : vector<1x256xf32> to vector<4x256xf32>
    %16 = arith.mulf %12, %15 : vector<4x256xf32>
    %c2_i32 = arith.constant 2 : i32
    %17 = tpu.dynamic_rotate %1 by %c2_i32 dim 1 : vector<4x256xf32>, i32 -> vector<4x256xf32>
    %c3 = arith.constant 3 : index
    %c0_9 = arith.constant 0 : index
    %c0_10 = arith.constant 0 : index
    %18 = vector.load %arg3[%c3, %c0_9, %c0_10] : memref<9x1x256xf32, #tpu.memory_space<vmem>>, vector<1x1x256xf32>
    %19 = vector.shape_cast %18 : vector<1x1x256xf32> to vector<1x256xf32>
    %20 = vector.broadcast %19 : vector<1x256xf32> to vector<4x256xf32>
    %21 = arith.mulf %17, %20 : vector<4x256xf32>
    %c254_i32 = arith.constant 254 : i32
    %22 = tpu.dynamic_rotate %1 by %c254_i32 dim 1 : vector<4x256xf32>, i32 -> vector<4x256xf32>
    %c5 = arith.constant 5 : index
    %c0_11 = arith.constant 0 : index
    %c0_12 = arith.constant 0 : index
    %23 = vector.load %arg3[%c5, %c0_11, %c0_12] : memref<9x1x256xf32, #tpu.memory_space<vmem>>, vector<1x1x256xf32>
    %24 = vector.shape_cast %23 : vector<1x1x256xf32> to vector<1x256xf32>
    %25 = vector.broadcast %24 : vector<1x256xf32> to vector<4x256xf32>
    %26 = arith.mulf %22, %25 : vector<4x256xf32>
    %c226_i32 = arith.constant 226 : i32
    %27 = tpu.dynamic_rotate %1 by %c226_i32 dim 1 : vector<4x256xf32>, i32 -> vector<4x256xf32>
    %c6 = arith.constant 6 : index
    %c0_13 = arith.constant 0 : index
    %c0_14 = arith.constant 0 : index
    %28 = vector.load %arg3[%c6, %c0_13, %c0_14] : memref<9x1x256xf32, #tpu.memory_space<vmem>>, vector<1x1x256xf32>
    %29 = vector.shape_cast %28 : vector<1x1x256xf32> to vector<1x256xf32>
    %30 = vector.broadcast %29 : vector<1x256xf32> to vector<4x256xf32>
    %31 = arith.mulf %27, %30 : vector<4x256xf32>
    %c224_i32 = arith.constant 224 : i32
    %32 = tpu.dynamic_rotate %1 by %c224_i32 dim 1 : vector<4x256xf32>, i32 -> vector<4x256xf32>
    %c7 = arith.constant 7 : index
    %c0_15 = arith.constant 0 : index
    %c0_16 = arith.constant 0 : index
    %33 = vector.load %arg3[%c7, %c0_15, %c0_16] : memref<9x1x256xf32, #tpu.memory_space<vmem>>, vector<1x1x256xf32>
    %34 = vector.shape_cast %33 : vector<1x1x256xf32> to vector<1x256xf32>
    %35 = vector.broadcast %34 : vector<1x256xf32> to vector<4x256xf32>
    %36 = arith.mulf %32, %35 : vector<4x256xf32>
    %c222_i32 = arith.constant 222 : i32
    %37 = tpu.dynamic_rotate %1 by %c222_i32 dim 1 : vector<4x256xf32>, i32 -> vector<4x256xf32>
    %c8 = arith.constant 8 : index
    %c0_17 = arith.constant 0 : index
    %c0_18 = arith.constant 0 : index
    %38 = vector.load %arg3[%c8, %c0_17, %c0_18] : memref<9x1x256xf32, #tpu.memory_space<vmem>>, vector<1x1x256xf32>
    %39 = vector.shape_cast %38 : vector<1x1x256xf32> to vector<1x256xf32>
    %40 = vector.broadcast %39 : vector<1x256xf32> to vector<4x256xf32>
    %41 = arith.mulf %37, %40 : vector<4x256xf32>
    %42 = tpu.concatenate %6, %11, %16, %21, %1, %26, %31, %36, %41 in 0 : vector<4x256xf32>, vector<4x256xf32>, vector<4x256xf32>, vector<4x256xf32>, vector<4x256xf32>, vector<4x256xf32>, vector<4x256xf32>, vector<4x256xf32>, vector<4x256xf32> -> vector<36x256xf32>
    %c0_19 = arith.constant 0 : index
    %c0_20 = arith.constant 0 : index
    %43 = vector.load %arg2[%c0_19, %c0_20] : memref<32x36xf32, #tpu.memory_space<vmem>>, vector<32x36xf32>
    %cst = arith.constant dense<0.000000e+00> : vector<32x256xf32>
    %44 = tpu.matmul %43, %42, %cst {dimension_numbers = #tpu.dot_dimension_numbers<[1], [0], [0], [1], [0, 0, 1, 1], [], []>} : vector<32x36xf32>, vector<36x256xf32>, vector<32x256xf32> -> vector<32x256xf32>
    %c0_21 = arith.constant 0 : index
    %c0_22 = arith.constant 0 : index
    %45 = vector.load %arg4[%c0_21, %c0_22] : memref<32x1xf32, #tpu.memory_space<vmem>>, vector<32x1xf32>
    %46 = vector.broadcast %45 : vector<32x1xf32> to vector<32x256xf32>
    %47 = arith.mulf %44, %46 : vector<32x256xf32>
    %c0_23 = arith.constant 0 : index
    %c0_24 = arith.constant 0 : index
    %48 = vector.load %arg5[%c0_23, %c0_24] : memref<32x1xf32, #tpu.memory_space<vmem>>, vector<32x1xf32>
    %49 = vector.broadcast %48 : vector<32x1xf32> to vector<32x256xf32>
    %50 = arith.addf %47, %49 : vector<32x256xf32>
    %cst_25 = arith.constant 0.000000e+00 : f32
    %51 = vector.broadcast %cst_25 : f32 to vector<32x256xf32>
    %52 = arith.maximumf %50, %51 : vector<32x256xf32>
    %c0_26 = arith.constant 0 : index
    %c0_27 = arith.constant 0 : index
    %c0_28 = arith.constant 0 : index
    %53 = vector.load %arg6[%c0_26, %c0_27, %c0_28] : memref<1x32x256xf32, #tpu.memory_space<vmem>>, vector<1x32x256xf32>
    %54 = vector.shape_cast %53 : vector<1x32x256xf32> to vector<32x256xf32>
    %55 = vector.shape_cast %52 : vector<32x256xf32> to vector<1x32x256xf32>
    tpu.vector_store %arg6[%c0_26, %c0_27, %c0_28], %55 {strides = array<i32>} : memref<1x32x256xf32, #tpu.memory_space<vmem>>, vector<1x32x256xf32>,
    return
  }
  func.func @transform_0(%arg0: i32) -> (i32, i32, i32) {
    %c0_i32 = arith.constant 0 : i32
    %c0_i32_0 = arith.constant 0 : i32
    %c0_i32_1 = arith.constant 0 : i32
    return %arg0, %c0_i32, %c0_i32_0 : i32, i32, i32
  }
  func.func @transform_1(%arg0: i32) -> (i32, i32) {
    %c0_i32 = arith.constant 0 : i32
    %c0_i32_0 = arith.constant 0 : i32
    %c0_i32_1 = arith.constant 0 : i32
    return %c0_i32, %c0_i32_0 : i32, i32
  }
  func.func @transform_2(%arg0: i32) -> (i32, i32, i32) {
    %c0_i32 = arith.constant 0 : i32
    %c0_i32_0 = arith.constant 0 : i32
    %c0_i32_1 = arith.constant 0 : i32
    %c0_i32_2 = arith.constant 0 : i32
    return %c0_i32, %c0_i32_0, %c0_i32_1 : i32, i32, i32
  }
  func.func @transform_3(%arg0: i32) -> (i32, i32) {
    %c0_i32 = arith.constant 0 : i32
    %c0_i32_0 = arith.constant 0 : i32
    %c0_i32_1 = arith.constant 0 : i32
    return %c0_i32, %c0_i32_0 : i32, i32
  }
  func.func @transform_4(%arg0: i32) -> (i32, i32) {
    %c0_i32 = arith.constant 0 : i32
    %c0_i32_0 = arith.constant 0 : i32
    %c0_i32_1 = arith.constant 0 : i32
    return %c0_i32, %c0_i32_0 : i32, i32
  }
  func.func @transform_5(%arg0: i32) -> (i32, i32, i32) {
    %c0_i32 = arith.constant 0 : i32
    %c0_i32_0 = arith.constant 0 : i32
    %c0_i32_1 = arith.constant 0 : i32
    return %arg0, %c0_i32, %c0_i32_0 : i32, i32, i32
  }
}

</mosaic_0001>

<bundles_post_ra>
// kernel: tpu_custom_call.1
= control target key start
LH: loop header
LB: loop body
LE: loop exit
PB: predicated region body
PF: predicated region fallthrough
CT: control target
= control target key end

     0   :  { %10 = vsyncpa [#allocation3], 0  ;;  %s1153_s0 = inlined_call_operand.vmem [shape: f32[2,4,256], index: 0, kind: input, shape index: {}]   ;;  %s1154_s1 = inlined_call_operand.vmem [shape: f32[32,36], index: 1, kind: input, shape index: {}]   ;;  %s1155_s2 = inlined_call_operand.vmem [shape: f32[9,1,256], index: 2, kind: input, shape index: {}]   ;;  %s1156_s3 = inlined_call_operand.vmem [shape: f32[32,1], index: 3, kind: input, shape index: {}]   ;;  %s1157_s4 = inlined_call_operand.vmem [shape: f32[32,1], index: 4, kind: input, shape index: {}]   ;;  %s1158_s5 = inlined_call_operand.hbm [shape: f32[2,32,256], index: 5, kind: output, shape index: {}]  }
   0x1   :  { %12 = vsyncpa [#allocation3 + $0x1], 0  ;;  %s901_s18 = smov 0   ;;  %s903_s19 = smov 0  }
   0x2   :  { %s905_s20 = smov 0   ;;  %s907_s21 = smov 0  }
   0x3 LB: > { %s922_s22 = sadd.s32 4294967295, %s856_s21   ;;  %s705_s23 = sadd.s32 4294967294, %s856_s21   ;;  %s856_s21 = sphi %s907_s21, %s1164_s21   ;;  %s852_s20 = sphi %s905_s20, %s1163_s20   ;;  %s848_s19 = sphi %s903_s19, %s1162_s19   ;;  %s844_s18 = sphi %s901_s18, %s1161_s18  }
   0x4   : > { %s926_s24 = sadd.s32 1, %s856_s21   ;;  %s135_s25 = sadd.s32 1, %s852_s20 }
   0x5   : > { %s132_s26 = ssub.s32 %s856_s21, %s926_s24  ;;  %p145_p0 = scmp.ne.s32.totalorder %s852_s20, %s848_s19 }
   0x6   : > { %p133_p1 = scmp.eq.s32.totalorder %s132_s26, 0  ;;  %p146_p2 = scmp.eq.s32.totalorder %s922_s22, 1 }
   0x7   : > { %p151_p3 = scmp.ne.s32.totalorder %s848_s19, %s844_s18  ;;  %p152_p4 = scmp.eq.s32.totalorder %s705_s23, 1 }
   0x8   : > { %s937_s27 = scalar_select %p133_p1, %s852_s20, %s135_s25  }
   0x9   : > { %p939_p5 = por %p146_p2, %p145_p0  ;;  %p943_p6 = por %p152_p4, %p151_p3 }
   0xa   : > { %p708_p7 = scmp.ge.s32.totalorder %s856_s21, 1  ;;  %p190_p8 = scmp.lt.s32.totalorder %s856_s21, 3 }
   0xc   : > { %p191_p9 = pnand %p708_p7, %p190_p8 }
   0xd   : > { %p218_p10 = scmp.lt.s32.totalorder (!%p191_p9), %s922_s22, 1  ;;  %s858_s10 = smov (!%p191_p9), 94  }
   0xe   : > { %194 = sbr.rel (%p191_p9) target bundleno = 392 (0x188), region = 40  ;;  %s859_s11 = smov (!%p191_p9), 96  }
   0xf   : > { %s860_s12 = smov (!%p191_p9), 126   ;;  %s861_s13 = smov (!%p191_p9), 98  }
  0x10   : > { %s862_s14 = smov (!%p191_p9), 2   ;;  %s863_s15 = smov (!%p191_p9), 32  }
  0x11   : > { %s865_s16 = smov (!%p191_p9), 30   ;;  %s867_s17 = smov (!%p191_p9), 34  }
  0x12   : > { %s868_s25 = smov (!%p191_p9), [#allocation2]  }
  0x13   : > { %s219_s30 = scalar_select %p218_p10, %s922_s22, 1  ;;  %v864_v2 = vmov 0.0   ;;  %v866_v3 = vmov 0   ;;  %v550_v4 = vld [vmem:[%s1156_s3 + $0x8] sm:$0xff]  ;;  %v549_v5 = vld [vmem:[%s1156_s3] sm:$0xff]  ;;  %v551_v6 = vld [vmem:[%s1156_s3 + $0x10] sm:$0xff]  ;;  %v231_v12 = vlaneseq }
  0x14   : > { %524 = vmatprep.mubr.f32.mxu0 %v864_v2  ;;  %536 = vmatprep.mubr.f32.mxu1 %v864_v2  ;;  %v552_v7 = vld [vmem:[%s1156_s3 + $0x18] sm:$0xff]  ;;  %v581_v8 = vld [vmem:[%s1157_s4] sm:$0xff]  ;;  %v582_v9 = vld [vmem:[%s1157_s4 + $0x8] sm:$0xff]  ;;  %vm428_vm1 = vcmask 1043456   ;;  %vm441_vm9 = vcmask 293888   ;;  %s800_s26 = sshll.u32 %s868_s25, 4  ;;  %s801_s26 = int_to_ptr.vmem [resolvable:$false] %s800_s26 }
  0x15   : > { %s730_s6 = sshll.u32 %s219_s30, 3  ;;  %794 = vset.pattern.permute.xlu1 %v866_v3  ;;  %793 = vset.pattern.permute.xlu0 %v866_v3  ;;  %v583_v10 = vld [vmem:[%s1157_s4 + $0x10] sm:$0xff]  ;;  %v584_v11 = vld [vmem:[%s1157_s4 + $0x18] sm:$0xff]  ;;  %v239_v13 = vshrl.u32 %v231_v12, 7  ;;  %v1002_v14 = vand.u32 127, %v231_v12  ;;  %s802_s30 = scalar_lea.vmem %s801_s26, 2048 }
  0x16   : > { %s222_s9 = scalar_lea.vmem %s1153_s0, %s730_s6  ;;  %v718_v17 = vld [vmem:[%s1155_s2 + $0x10] sm:$0x3]  ;;  %v715_v22 = vld [vmem:[%s1155_s2 + $0xa] sm:$0x3]  ;;  %v717_v23 = vld [vmem:[%s1155_s2 + $0xe] sm:$0x3] }
  0x17   : > { %v954_v0 = vld [vmem:[%s222_s9] sm:$0xff]  ;;  %v1004_v15 = vsub.s32 0, %v239_v13  ;;  %v1006_v16 = vsub.s32 1, %v239_v13  ;;  %vm386_vm0 = vcmp.lt.s32.totalorder %v1002_v14, 94  ;;  %vm320_vm2 = vcmp.lt.s32.totalorder %v1002_v14, 126 }
  0x18   : > { %382 = vrot.lane.b32.xlu1 %v954_v0, %s858_s10  ;;  %360 = vrot.lane.b32.xlu0 %v954_v0, %s859_s11  ;;  %v960_v1 = vcombine.high %v954_v0, %v954_v0  ;;  %vm364_vm3 = vcmp.lt.s32.totalorder %v1002_v14, 96  ;;  %v716_v29 = vld [vmem:[%s1155_s2 + $0xc] sm:$0x3]  ;;  %vm342_vm4 = vcmp.lt.s32.totalorder %v1002_v14, 98  ;;  %v714_v56 = vld [vmem:[%s1155_s2 + $0x6] sm:$0x3] }
  0x19   : > { %v395_v20 = vrot.slane %v718_v17, %v1004_v15  ;;  %v399_v21 = vrot.slane %v718_v17, %v1006_v16  ;;  %v333_v28 = vrot.slane %v715_v22, %v1006_v16  ;;  %v373_v32 = vrot.slane %v717_v23, %v1004_v15  ;;  %v236_v13 = vld [vmem:[%s1155_s2] sm:$0x3] }
  0x1a   : > { %v377_v33 = vrot.slane %v717_v23, %v1006_v16  ;;  %v329_v34 = vrot.slane %v715_v22, %v1004_v15  ;;  %v351_v37 = vrot.slane %v716_v29, %v1004_v15  ;;  %v355_v45 = vrot.slane %v716_v29, %v1006_v16 }
  0x1b   : > { %vm298_vm5 = vcmp.lt.s32.totalorder %v1002_v14, 2  ;;  %v307_v62 = vrot.slane %v714_v56, %v1004_v15  ;;  %v311_v63 = vrot.slane %v714_v56, %v1006_v16  ;;  %vm254_vm6 = vcmp.lt.s32.totalorder %v1002_v14, 32 }
  0x1c   : > { %316 = vrot.lane.b32.xlu0 %v954_v0, %s860_s12  ;;  %384 = vrot.lane.b32.xlu1 %v960_v1, %s858_s10  ;;  %vm276_vm7 = vcmp.lt.s32.totalorder %v1002_v14, 30  ;;  %vm233_vm8 = vcmp.lt.s32.totalorder %v1002_v14, 34  ;;  %v241_v23 = vrot.slane %v236_v13, %v1004_v15  ;;  %v439_v14 = vld [vmem:[%s1154_s1 + $0x10] sm:$0xff]  ;;  %s215_s10 = sand.u32 1, %s848_s19  }
  0x20   : > { %318 = vrot.lane.b32.xlu1 %v960_v1, %s860_s12  ;;  %362 = vrot.lane.b32.xlu0 %v960_v1, %s859_s11  ;;  %s709_s11 = sshll.u32 %s215_s10, 6 }
  0x21   : > { %s217_s12 = scalar_lea.vmem [#allocation2], %s709_s11 }
  0x24   : > { %340 = vrot.lane.b32.xlu1 %v960_v1, %s861_s13  ;;  %338 = vrot.lane.b32.xlu0 %v954_v0, %s861_s13  ;;  %s731_s13 = sshll.u32 %s922_s22, 10  ;;  %s1113_s22 = scalar_lea.sflag [#allocation3], %s215_s10 }
  0x28   : > { %296 = vrot.lane.b32.xlu1 %v960_v1, %s862_s14  ;;  %294 = vrot.lane.b32.xlu0 %v954_v0, %s862_s14  ;;  %s643_s14 = sshll.u32 %s217_s12, 4  ;;  %s1109_s14 = int_to_ptr.vmem [resolvable:$true] %s643_s14 }
  0x29   : > { %s796_s23 = scalar_lea.vmem %s1109_s14, 1024  ;;  %p803_p0 = scmp.lt.s32.totalorder %s1109_s14, %s801_s26 }
  0x2a   : > { %p797_p11 = scmp.ne.s32.totalorder %s1109_s14, %s796_s23  ;;  %p804_p1 = scmp.lt.s32.totalorder %s802_s30, %s796_s23 }
  0x2c   : > { %252 = vrot.lane.b32.xlu1 %v960_v1, %s863_s15  ;;  %250 = vrot.lane.b32.xlu0 %v954_v0, %s863_s15  ;;  %p798_p12 = pnand %p797_p11, %p939_p5  ;;  %p805_p2 = por %p804_p1, %p803_p0 }
  0x2e   : > { %p799_p13 = pneg %p798_p12 }
  0x30   : > { %274 = vrot.lane.b32.xlu1 %v960_v1, %s865_s16  ;;  %272 = vrot.lane.b32.xlu0 %v954_v0, %s865_s16  ;;  %p806_p3 = pnand %p805_p2, %p799_p13 }
  0x34   : > { %229 = vrot.lane.b32.xlu1 %v960_v1, %s867_s17  ;;  %227 = vrot.lane.b32.xlu0 %v954_v0, %s867_s17  ;;  %s1107_s17 = scalar_lea.hbm %s1158_s5, %s731_s13 }
  0x38   : > { %560 = vperm.xlu1 %794, %v550_v4   ;;  %555 = vperm.xlu0 %793, %v549_v5  }
  0x3c   : > { %565 = vperm.xlu1 %794, %v551_v6   ;;  %570 = vperm.xlu0 %793, %v552_v7   ;;  %v712_v6 = vld [vmem:[%s1155_s2 + $0x2] sm:$0x3] }
  0x3d   : > { %v263_v12 = vrot.slane %v712_v6, %v1004_v15 }
  0x40   : > { %587 = vperm.xlu1 %794, %v581_v8   ;;  %592 = vperm.xlu0 %793, %v582_v9   ;;  %v713_v8 = vld [vmem:[%s1155_s2 + $0x4] sm:$0x3] }
  0x41   : > { %v285_v17 = vrot.slane %v713_v8, %v1004_v15 }
  0x44   : > { %597 = vperm.xlu1 %794, %v583_v10   ;;  %602 = vperm.xlu0 %793, %v584_v11  }
  0x8a   : > { %v383_v18 = vpop.permute.xlu1 %382  ;;  %v361_v19 = vpop.permute.xlu0 %360 }
  0x8e   : > { %v317_v24 = vpop.permute.xlu0 %316  ;;  %v385_v25 = vpop.permute.xlu1 %384 }
  0x8f   : > { %v387_v26 = vsel %vm386_vm0, %v383_v18, %v385_v25  ;;  %v388_v27 = vsel %vm386_vm0, %v385_v25, %v383_v18  ;;  %v289_v18 = vrot.slane %v713_v8, %v1006_v16 }
  0x90   : > { %v402_v30 = vmul.f32 %v395_v20, %v387_v26  ;;  %v403_v31 = vmul.f32 %v399_v21, %v388_v27 }
  0x92   : > { %719 = vmatprep.subr.msk.mxu0 %vm428_vm1, %v403_v31  ;;  %732 = vmatprep.subr.msk.mxu1 %vm428_vm1, %v403_v31  ;;  %v319_v35 = vpop.permute.xlu1 %318  ;;  %v363_v36 = vpop.permute.xlu0 %362 }
  0x93   : > { %v321_v38 = vsel %vm320_vm2, %v317_v24, %v319_v35  ;;  %v322_v39 = vsel %vm320_vm2, %v319_v35, %v317_v24  ;;  %v365_v40 = vsel %vm364_vm3, %v361_v19, %v363_v36  ;;  %v366_v41 = vsel %vm364_vm3, %v363_v36, %v361_v19  ;;  %720 = vmatpush1.msk.msra.mxu0 %vm428_vm1, %v402_v30 }
  0x94   : > { %v337_v42 = vmul.f32 %v333_v28, %v322_v39  ;;  %v380_v43 = vmul.f32 %v373_v32, %v365_v40  ;;  %v381_v44 = vmul.f32 %v377_v33, %v366_v41  ;;  %737 = vmatpush1.msk.msra.mxu1 %vm428_vm1, %v402_v30  ;;  %v336_v46 = vmul.f32 %v329_v34, %v321_v38 }
  0x95   : > { %v245_v24 = vrot.slane %v236_v13, %v1006_v16 }
  0x96   : > { %v341_v47 = vpop.permute.xlu1 %340  ;;  %v339_v48 = vpop.permute.xlu0 %338  ;;  %v419_v49 = vrot.slane %v337_v42, 4  ;;  %v424_v52 = vrot.slane %v380_v43, 4  ;;  %v425_v53 = vrot.slane %v381_v44, 4  ;;  %v418_v57 = vrot.slane %v336_v46, 4  ;;  %v437_v43 = vld [vmem:[%s1154_s1] sm:$0xff]  ;;  %v438_v44 = vld [vmem:[%s1154_s1 + $0x8] sm:$0xff] }
  0x97   : > { %v343_v50 = vsel %vm342_vm4, %v339_v48, %v341_v47  ;;  %v344_v51 = vsel %vm342_vm4, %v341_v47, %v339_v48 }
  0x98   : > { %v358_v54 = vmul.f32 %v351_v37, %v343_v50  ;;  %v359_v55 = vmul.f32 %v355_v45, %v344_v51  ;;  %v434_v5 = vsel %vm428_vm1, %v960_v1, %v419_v49  ;;  %v433_v7 = vsel %vm428_vm1, %v954_v0, %v418_v57  ;;  %v440_v45 = vld [vmem:[%s1154_s1 + $0x18] sm:$0xff] }
  0x99   : > { %v267_v0 = vrot.slane %v712_v6, %v1006_v16 }
  0x9a   : > { %v297_v58 = vpop.permute.xlu1 %296  ;;  %v295_v59 = vpop.permute.xlu0 %294  ;;  %v436_v60 = vsel %vm428_vm1, %v359_v55, %v425_v53  ;;  %v435_v61 = vsel %vm428_vm1, %v358_v54, %v424_v52 }
  0x9b   : > { %484 = vmatprep.subr.mxu0 %v436_v60  ;;  %733 = vmatprep.subr.mxu1 %v436_v60  ;;  %v299_v3 = vsel %vm298_vm5, %v295_v59, %v297_v58  ;;  %v300_v4 = vsel %vm298_vm5, %v297_v58, %v295_v59 }
  0x9c   : > { %485 = vmatpush1.msra.mxu0 %v435_v61  ;;  %738 = vmatpush1.msra.mxu1 %v435_v61  ;;  %v314_v1 = vmul.f32 %v307_v62, %v300_v4  ;;  %v315_v11 = vmul.f32 %v311_v63, %v299_v3 }
  0x9d   : > { %486 = vmatprep.subr.mxu0 %v434_v5  ;;  %734 = vmatprep.subr.mxu1 %v434_v5 }
  0x9e   : > { %v253_v9 = vpop.permute.xlu1 %252  ;;  %487 = vmatpush1.msra.mxu0 %v433_v7  ;;  %739 = vmatpush1.msra.mxu1 %v433_v7  ;;  %v251_v10 = vpop.permute.xlu0 %250  ;;  %v412_v25 = vrot.slane %v314_v1, 4  ;;  %v413_v26 = vrot.slane %v315_v11, 4 }
  0x9f   : > { %v255_v19 = vsel %vm254_vm6, %v251_v10, %v253_v9  ;;  %v256_v20 = vsel %vm254_vm6, %v253_v9, %v251_v10 }
  0xa0   : > { %v270_v29 = vmul.f32 %v263_v12, %v256_v20  ;;  %v271_v30 = vmul.f32 %v267_v0, %v255_v19 }
  0xa2   : > { %v275_v21 = vpop.permute.xlu1 %274  ;;  %v273_v22 = vpop.permute.xlu0 %272  ;;  %v406_v16 = vrot.slane %v270_v29, 4  ;;  %v407_v38 = vrot.slane %v271_v30, 4 }
  0xa3   : > { %v277_v27 = vsel %vm276_vm7, %v273_v22, %v275_v21  ;;  %v278_v28 = vsel %vm276_vm7, %v275_v21, %v273_v22 }
  0xa4   : > { %v292_v31 = vmul.f32 %v285_v17, %v278_v28  ;;  %v293_v32 = vmul.f32 %v289_v18, %v277_v27 }
  0xa6   : > { %v230_v33 = vpop.permute.xlu1 %229  ;;  %v228_v34 = vpop.permute.xlu0 %227  ;;  %v432_v35 = vsel %vm428_vm1, %v293_v32, %v413_v26  ;;  %v431_v36 = vsel %vm428_vm1, %v292_v31, %v412_v25 }
  0xa7   : > { %v234_v37 = vsel %vm233_vm8, %v228_v34, %v230_v33  ;;  %v235_v15 = vsel %vm233_vm8, %v230_v33, %v228_v34  ;;  %488 = vmatprep.subr.mxu0 %v432_v35  ;;  %735 = vmatprep.subr.mxu1 %v432_v35 }
  0xa8   : > { %v248_v39 = vmul.f32 %v241_v23, %v235_v15  ;;  %v249_v40 = vmul.f32 %v245_v24, %v234_v37  ;;  %489 = vmatpush1.msra.mxu0 %v431_v36  ;;  %740 = vmatpush1.msra.mxu1 %v431_v36 }
  0xaa   : > { %v430_v41 = vsel %vm428_vm1, %v249_v40, %v407_v38  ;;  %v429_v42 = vsel %vm428_vm1, %v248_v39, %v406_v16 }
  0xab   : > { %490 = vmatprep.subr.mxu0 %v430_v41  ;;  %736 = vmatprep.subr.mxu1 %v430_v41 }
  0xac   : > { %491 = vmatpush1.msra.mxu0 %v429_v42  ;;  %741 = vmatpush1.msra.mxu1 %v429_v42 }
  0xad   : > { %721 = vmatmul.mubr.msk.f32.vlgmr.msra.gmra.mxu0 %vm441_vm9, %v437_v43  ;;  %723 = vmatmul.mubr.msk.f32.vlgmr.msra.gmra.mxu1 %vm441_vm9, %v439_v14 }
  0xae   : > { %530 = vmatprep.mubr.f32.mxu0 %v864_v2  ;;  %542 = vmatprep.mubr.f32.mxu1 %v864_v2 }
  0xb1   : > { %722 = vmatmul.mubr.msk.f32.gmra.mxu0 %vm441_vm9, %v438_v44  ;;  %724 = vmatmul.mubr.msk.f32.gmra.mxu1 %vm441_vm9, %v440_v45 }
  0xb3   : > { %v561_v46 = vpop.permute.xlu1 %560  ;;  %v556_v47 = vpop.permute.xlu0 %555 }
  0xb7   : > { %v566_v48 = vpop.permute.xlu1 %565  ;;  %v571_v49 = vpop.permute.xlu0 %570 }
  0xbb   : > { %v588_v50 = vpop.permute.xlu1 %587  ;;  %v593_v53 = vpop.permute.xlu0 %592 }
  0xbf   : > { %v598_v2 = vpop.permute.xlu1 %597  ;;  %v603_v1 = vpop.permute.xlu0 %602 }
 0x16d   : > { %v526_v51 = vpop.f32.mrf.mxu0  ;;  %v538_v52 = vpop.f32.mrf.mxu1 }
 0x16e   : > { %v573_v54 = vmul.f32 %v556_v47, %v526_v51  ;;  %v577_v55 = vmul.f32 %v566_v48, %v538_v52 }
 0x16f   : > { %v528_v56 = vpop.f32.mrf.mxu0  ;;  %v540_v57 = vpop.f32.mrf.mxu1 }
 0x170   : > { %v605_v58 = vadd.f32 %v588_v50, %v573_v54  ;;  %v609_v59 = vadd.f32 %v598_v2, %v577_v55  ;;  %v574_v60 = vmul.f32 %v556_v47, %v528_v56  ;;  %v578_v61 = vmul.f32 %v566_v48, %v540_v57 }
 0x171   : > { %v532_v62 = vpop.f32.mrf.mxu0  ;;  %v544_v63 = vpop.f32.mrf.mxu1 }
 0x172   : > { %v613_v3 = vmax.f32 %v605_v58, 0.0  ;;  %v617_v4 = vmax.f32 %v609_v59, 0.0  ;;  %v606_v5 = vadd.f32 %v588_v50, %v574_v60  ;;  %v610_v6 = vadd.f32 %v598_v2, %v578_v61 }
 0x173   : > { %v575_v7 = vmul.f32 %v561_v46, %v532_v62  ;;  %v579_v8 = vmul.f32 %v571_v49, %v544_v63  ;;  %v534_v9 = vpop.f32.mrf.mxu0  ;;  %v546_v10 = vpop.f32.mrf.mxu1 }
 0x174   : > { %621 = vst [vmem:[%s217_s12] sm:$0xff] %v613_v3  ;;  %625 = vst [vmem:[%s217_s12 + $0x20] sm:$0xff] %v617_v4  ;;  %v614_v11 = vmax.f32 %v606_v5, 0.0  ;;  %v618_v12 = vmax.f32 %v610_v6, 0.0  ;;  %v576_v13 = vmul.f32 %v561_v46, %v534_v9  ;;  %v580_v0 = vmul.f32 %v571_v49, %v546_v10 }
 0x175   : > { %v607_v17 = vadd.f32 %v593_v53, %v575_v7  ;;  %v611_v18 = vadd.f32 %v603_v1, %v579_v8 }
 0x176   : > { %622 = vst [vmem:[%s217_s12 + $0x8] sm:$0xff] %v614_v11  ;;  %626 = vst [vmem:[%s217_s12 + $0x28] sm:$0xff] %v618_v12  ;;  %v608_v19 = vadd.f32 %v593_v53, %v576_v13  ;;  %v612_v20 = vadd.f32 %v603_v1, %v580_v0 }
 0x177   : > { %v615_v21 = vmax.f32 %v607_v17, 0.0  ;;  %v619_v22 = vmax.f32 %v611_v18, 0.0 }
 0x178   : > { %v616_v23 = vmax.f32 %v608_v19, 0.0  ;;  %v620_v24 = vmax.f32 %v612_v20, 0.0 }
 0x179   : > { %623 = vst [vmem:[%s217_s12 + $0x10] sm:$0xff] %v615_v21  ;;  %627 = vst [vmem:[%s217_s12 + $0x30] sm:$0xff] %v619_v22 }
 0x17a   : > { %624 = vst [vmem:[%s217_s12 + $0x18] sm:$0xff] %v616_v23  ;;  %628 = vst [vmem:[%s217_s12 + $0x38] sm:$0xff] %v620_v24 }
 0x17b   : > { %809 = shalt.err (!%p806_p3)
}
 0x17c   : > { %s810_s6 = scalar_lea.hbm %s1107_s17, 1024  ;;  %s814_s9 = scalar_lea.hbm %s1158_s5, 2048 }
 0x17d   : > { %p811_p4 = scmp.ne.s32.totalorder %s1107_s17, %s810_s6  ;;  %p815_p9 = scmp.lt.s32.totalorder %s1107_s17, %s1158_s5 }
 0x17e   : > { %p816_p10 = scmp.lt.s32.totalorder %s814_s9, %s810_s6 }
 0x17f   : > { %p812_p7 = pnand %p811_p4, %p939_p5 }
 0x180   : > { %p817_p11 = por %p816_p10, %p815_p9 }
 0x181   : > { %p813_p8 = pneg %p812_p7 }
 0x183   : > { %p818_p12 = pnand %p817_p11, %p813_p8 }
 0x185   : > { %821 = shalt.err (!%p818_p12)
}
 0x186   : > { %s869_s12 = smov 256   ;;  %s870_s13 = smov 16  }
 0x187   : > { %742 = dma.vmem_to_hbm [thread:$0]  (%p939_p5), %s1109_s14, 1024, %s1107_s17, %s1113_s22, %s869_s12, %s869_s12, %s870_s13  }
 0x188 PF: > { %p748_p13 = scmp.ge.s32.totalorder %s856_s21, 2  ;;  %s658_s15 = sand.u32 1, %s844_s18  }
 0x189   : > { %s659_s16 = scalar_lea.sflag [#allocation3], %s658_s15 }
 0x18a   : > { %p745_p0 = pnand %p748_p13, %p943_p6 }
 0x18c   : > { %p746_p1 = pneg %p745_p0 }
 0x18e   : > { %839 = dma.done.wait (%p746_p1), %s659_s16, 1024  }
 0x18f   : > { %841 = vsyncadd (%p746_p1), %s659_s16, 4294966272  ;;  %p15_p2 = scmp.ge.s32.totalorder %s926_s24, 4   ;;  %s1161_s18 = smov %s848_s19 }
 0x190   : > { %s1162_s19 = smov %s852_s20  ;;  %s1163_s20 = smov %s937_s27 }
 0x191   : > { %s1164_s21 = smov %s926_s24  ;;  %17 = sbr.rel (!%p15_p2) target bundleno = 3 (0x3), region = 82 }
 0x196   :  { %664 = vsyncpa [#allocation3], 1 }
 0x197   :  { %666 = vsyncpa [#allocation3 + $0x1], 1 }

</bundles_post_ra>
